<compile_context>
chip_gen: v7x
topology: tpu7x:2x2x1
jax: 0.10.0
libtpu: 0.0.40
codegen_flags: <defaults>
</compile_context>

<pallas_src>
import functools

import jax
import jax.numpy as jnp
from jax import lax
from jax.experimental import pallas as pl
from jax.experimental.pallas import tpu as pltpu


_BIG = 1e30  # mask sentinel: drives `term` far negative so relu() yields 0.


# --------------------------------------------------------------------------
# Kernel 1: pairwise HALF Euclidean distance matrix (tiled Gram trick).
# --------------------------------------------------------------------------
def _half_pdist_kernel(xi_ref, xj_ref, ni_col_ref, nj_row_ref, h_ref):
    # A @ B^T without materializing a transpose: contract last dims on MXU.
    g = lax.dot_general(xi_ref[...], xj_ref[...], (((1,), (1,)), ((), ())),
                        preferred_element_type=jnp.float32)       # (TM, TN)
    d2 = jnp.maximum(ni_col_ref[...] + nj_row_ref[...] - 2.0 * g, 0.0)
    h_ref[...] = 0.5 * jnp.sqrt(d2)               # h(i,j) = 0.5 * d(i,j)


# --------------------------------------------------------------------------
# Kernel 2: masked triplet-loss reduction over anchor tiles.
# --------------------------------------------------------------------------
def _triplet_tile_kernel(lab_sref, h_full_ref, h_rows_ref, lab_col_ref,
                         lab_row_ref, valid_col_ref, valid_row_ref,
                         loss_ref, cnt_ref, *, ta, margin):
    g = pl.program_id(0)
    a_base = g * ta

    h = h_full_ref[...]                                 # (Np, Np) = 0.5*d
    np_ = h.shape[0]
    lab_col = lab_col_ref[...]                          # (Np, 1) int32
    lab_row = lab_row_ref[...]                          # (1, Np) int32
    valid_col = valid_col_ref[...] != 0                 # (Np, 1) bool (p ok)
    valid_row = valid_row_ref[...] != 0                 # (1, Np) bool (n ok)

    p_iota_col = lax.broadcasted_iota(jnp.int32, (np_, 1), 0)       # p index

    # One-hot selector: column t of (h @ e_sel) is h[:, a_base + t], i.e. the
    # anchor half-distances laid out as a *column* over p (sublanes).  Using
    # the otherwise idle MXU avoids dynamic lane slicing / XLU transposes.
    sel_w = 128                                          # lane-dense width
    p_i = lax.broadcasted_iota(jnp.int32, (np_, sel_w), 0)
    t_i = lax.broadcasted_iota(jnp.int32, (np_, sel_w), 1)
    e_sel = (p_i == t_i + a_base).astype(jnp.float32)
    h_ap_cols = jnp.dot(h, e_sel, preferred_element_type=jnp.float32)

    acc = jnp.zeros((np_, np_), jnp.float32)
    cnt = jnp.zeros((), jnp.float32)

    for t in range(ta):                                 # static unroll (ta=8)
        ia = a_base + t
        lab_a = lab_sref[ia]                            # scalar label (SMEM)

        # Masks folded into the rank-1 operands (so no full-2D mask muls).
        # Padded anchors are killed automatically: p > ia forces p into the
        # padded (invalid) region, so pos_mask is all-False.
        pos_mask = (lab_col == lab_a) & (p_iota_col > ia) & valid_col  # (Np,1)
        neg_mask = (lab_row != lab_a) & valid_row                      # (1,Np)

        bias_col = jnp.where(pos_mask,
                             2.0 * h_ap_cols[:, t:t + 1] + margin,    # d(a,p)+m
                             -_BIG)                                   # (Np, 1)
        an_row = jnp.where(neg_mask, h_rows_ref[t:t + 1, :], _BIG)    # 0.5*d(a,n)

        # term[p,n] = d(a,p) + margin - 0.5*d(a,n) - 0.5*d(p,n)
        term = bias_col - an_row - h                                  # (Np, Np)
        acc = acc + jnp.maximum(term, 0.0)

        cnt = cnt + (jnp.sum(pos_mask.astype(jnp.float32))
                     * jnp.sum(neg_mask.astype(jnp.float32)))

    loss_ref[...] = jnp.sum(acc) + jnp.zeros_like(loss_ref)   # (1,1,128)
    cnt_ref[...] = cnt + jnp.zeros_like(cnt_ref)


# --------------------------------------------------------------------------
# Wrapper
# --------------------------------------------------------------------------
def online_triplet_loss_v4(embeddings, target, margin=1.0):
    """embeddings: (N, D) float32/bfloat16, target: (N,) int labels.

    Returns (mean_triplet_loss, num_triplets) matching
    OnlineTripletLossV4.forward with AllTripletSelector semantics.
    """
    n, d = embeddings.shape
    n_pad = ((n + 127) // 128) * 128

    # Keep bf16 inputs in bf16 for the MXU; everything else goes f32.
    compute_dtype = (jnp.bfloat16 if embeddings.dtype == jnp.bfloat16
                     else jnp.float32)
    x = embeddings.astype(compute_dtype)
    x_pad = jnp.zeros((n_pad, d), compute_dtype).at[:n].set(x)

    lab = target.astype(jnp.int32)
    lab_pad = jnp.full((n_pad,), -1, dtype=jnp.int32).at[:n].set(lab)
    valid = (jnp.arange(n_pad) < n).astype(jnp.int32)

    # Squared norms precomputed once, streamed in both orientations so the
    # distance kernel does no in-kernel reductions or relayouts.
    xf = x_pad.astype(jnp.float32)
    norms = jnp.sum(xf * xf, axis=-1)
    norms_col = norms.reshape(n_pad, 1)
    norms_row = norms.reshape(1, n_pad)

    # ---- Kernel 1: (n_pad, n_pad) HALF-distance matrix ----
    tm = tn = 128
    hmat = pl.pallas_call(
        _half_pdist_kernel,
        out_shape=jax.ShapeDtypeStruct((n_pad, n_pad), jnp.float32),
        grid_spec=pltpu.PrefetchScalarGridSpec(
            num_scalar_prefetch=0,
            grid=(n_pad // tm, n_pad // tn),
            in_specs=[
                pl.BlockSpec((tm, d), lambda i, j: (i, 0)),
                pl.BlockSpec((tn, d), lambda i, j: (j, 0)),
                pl.BlockSpec((tm, 1), lambda i, j: (i, 0)),
                pl.BlockSpec((1, tn), lambda i, j: (0, j)),
            ],
            out_specs=pl.BlockSpec((tm, tn), lambda i, j: (i, j)),
        ),
        compiler_params=pltpu.CompilerParams(
            dimension_semantics=("parallel", "parallel")),
    )(x_pad, x_pad, norms_col, norms_row)

    # ---- Kernel 2: triplet reduction over anchor tiles ----
    ta = 8
    g_tiles = pl.cdiv(n, ta)            # only real anchors, not padded ones
    lab_col = lab_pad.reshape(n_pad, 1)
    lab_row = lab_pad.reshape(1, n_pad)
    valid_col = valid.reshape(n_pad, 1)
    valid_row = valid.reshape(1, n_pad)

    kernel = functools.partial(_triplet_tile_kernel, ta=ta,
                               margin=float(margin))
    loss_part, cnt_part = pl.pallas_call(
        kernel,
        out_shape=(jax.ShapeDtypeStruct((g_tiles, 1, 128), jnp.float32),
                   jax.ShapeDtypeStruct((g_tiles, 1, 128), jnp.float32)),
        grid_spec=pltpu.PrefetchScalarGridSpec(
            num_scalar_prefetch=1,                       # labels -> SMEM
            grid=(g_tiles,),
            in_specs=[
                pl.BlockSpec((n_pad, n_pad), lambda g, lab: (0, 0)),  # 0.5*d_pn
                pl.BlockSpec((ta, n_pad), lambda g, lab: (g, 0)),     # 0.5*d(a,:)
                pl.BlockSpec((n_pad, 1), lambda g, lab: (0, 0)),
                pl.BlockSpec((1, n_pad), lambda g, lab: (0, 0)),
                pl.BlockSpec((n_pad, 1), lambda g, lab: (0, 0)),
                pl.BlockSpec((1, n_pad), lambda g, lab: (0, 0)),
            ],
            out_specs=[
                pl.BlockSpec((1, 1, 128), lambda g, lab: (g, 0, 0)),
                pl.BlockSpec((1, 1, 128), lambda g, lab: (g, 0, 0)),
            ],
        ),
        compiler_params=pltpu.CompilerParams(
            dimension_semantics=("parallel",)),
    )(lab_pad, hmat, hmat, lab_col, lab_row, valid_col, valid_row)

    total_loss = jnp.sum(loss_part[:, 0, 0])
    # Per-tile counts are exact small integers in f32; sum exactly in int32.
    total_cnt = jnp.sum(cnt_part[:, 0, 0].astype(jnp.int32))
    mean_loss = total_loss / total_cnt.astype(jnp.float32)  # NaN iff 0 (torch)
    return mean_loss, total_cnt


# --------------------------------------------------------------------------
# Pure-JAX reference (mirrors the PyTorch forward with AllTripletSelector).
# --------------------------------------------------------------------------
def _reference_loss(embeddings, target, margin=1.0):
    x = embeddings.astype(jnp.float32)
    diff = x[:, None, :] - x[None, :, :]
    dmat = jnp.sqrt(jnp.maximum(jnp.sum(diff * diff, axis=-1), 0.0))
    same = target[:, None] == target[None, :]
    n = x.shape[0]
    idx = jnp.arange(n)
    ap_mask = same & (idx[:, None] < idx[None, :])               # (A, P)
    an_mask = jnp.logical_not(same)                              # (A, Nn)
    tri_mask = ap_mask[:, :, None] & an_mask[:, None, :]         # (A, P, Nn)
    term = (dmat[:, :, None]
            - 0.5 * (dmat[:, None, :] + dmat[None, :, :]) + margin)
    losses = jnp.maximum(term, 0.0) * tri_mask.astype(jnp.float32)
    cnt = jnp.sum(tri_mask)
    return jnp.sum(losses) / cnt, cnt


if __name__ == "__main__":
    key = jax.random.PRNGKey(0)
    N, D = 8, 32
    margin = 1.0
    embeddings = jax.random.normal(key, (N, D), dtype=jnp.float32)
    # Deterministic labels with guaranteed positives and negatives.
    target = jnp.array([0, 0, 1, 1, 2, 2, 0, 1], dtype=jnp.int32)

    loss, cnt = online_triplet_loss_v4(embeddings, target, margin=margin)
    loss = jax.block_until_ready(loss)
    cnt = jax.block_until_ready(cnt)

    ref_loss, ref_cnt = _reference_loss(embeddings, target, margin=margin)
    assert jnp.allclose(loss, ref_loss, atol=1e-3, rtol=1e-3), (loss, ref_loss)
    assert int(cnt) == int(ref_cnt), (cnt, ref_cnt)

    print("KERNEL_OK")
</pallas_src>

<mosaic_0001>
module attributes {stable_mosaic.version = 11 : i64} {
  func.func @_half_pdist_kernel(%arg0: i32, %arg1: i32, %arg2: memref<128x32xf32, #tpu.memory_space<vmem>>, %arg3: memref<128x32xf32, #tpu.memory_space<vmem>>, %arg4: memref<128x1xf32, #tpu.memory_space<vmem>>, %arg5: memref<1x128xf32, #tpu.memory_space<vmem>>, %arg6: memref<128x128xf32, #tpu.memory_space<vmem>>) attributes {dimension_semantics = [#tpu.dimension_semantics<parallel>, #tpu.dimension_semantics<parallel>], iteration_bounds = array<i64: 1, 1>, scalar_prefetch = 0 : i64, scratch_operands = 0 : i64, tpu.core_type = #tpu.core_type<tc>, window_params = [{transform_indices = @transform_0, window_bounds = array<i64: 128, 32>}, {transform_indices = @transform_1, window_bounds = array<i64: 128, 32>}, {transform_indices = @transform_2, window_bounds = array<i64: 128, 1>}, {transform_indices = @transform_3, window_bounds = array<i64: 1, 128>}, {transform_indices = @transform_4, window_bounds = array<i64: 128, 128>}]} {
    %c0 = arith.constant 0 : index
    %c0_0 = arith.constant 0 : index
    %0 = vector.load %arg2[%c0, %c0_0] : memref<128x32xf32, #tpu.memory_space<vmem>>, vector<128x32xf32>
    %c0_1 = arith.constant 0 : index
    %c0_2 = arith.constant 0 : index
    %1 = vector.load %arg3[%c0_1, %c0_2] : memref<128x32xf32, #tpu.memory_space<vmem>>, vector<128x32xf32>
    %cst = arith.constant dense<0.000000e+00> : vector<128x128xf32>
    %2 = tpu.matmul %0, %1, %cst {dimension_numbers = #tpu.dot_dimension_numbers<[1], [1], [0], [0], [0, 0, 1, 0], [], []>} : vector<128x32xf32>, vector<128x32xf32>, vector<128x128xf32> -> vector<128x128xf32>
    %c0_3 = arith.constant 0 : index
    %c0_4 = arith.constant 0 : index
    %3 = vector.load %arg4[%c0_3, %c0_4] : memref<128x1xf32, #tpu.memory_space<vmem>>, vector<128x1xf32>
    %c0_5 = arith.constant 0 : index
    %c0_6 = arith.constant 0 : index
    %4 = vector.load %arg5[%c0_5, %c0_6] : memref<1x128xf32, #tpu.memory_space<vmem>>, vector<1x128xf32>
    %5 = vector.broadcast %3 : vector<128x1xf32> to vector<128x128xf32>
    %6 = vector.broadcast %4 : vector<1x128xf32> to vector<128x128xf32>
    %7 = arith.addf %5, %6 : vector<128x128xf32>
    %cst_7 = arith.constant 2.000000e+00 : f32
    %8 = vector.broadcast %cst_7 : f32 to vector<128x128xf32>
    %9 = arith.mulf %8, %2 : vector<128x128xf32>
    %10 = arith.subf %7, %9 : vector<128x128xf32>
    %cst_8 = arith.constant 0.000000e+00 : f32
    %11 = vector.broadcast %cst_8 : f32 to vector<128x128xf32>
    %12 = arith.maximumf %10, %11 : vector<128x128xf32>
    %13 = math.sqrt %12 : vector<128x128xf32>
    %cst_9 = arith.constant 5.000000e-01 : f32
    %14 = vector.broadcast %cst_9 : f32 to vector<128x128xf32>
    %15 = arith.mulf %14, %13 : vector<128x128xf32>
    %c0_10 = arith.constant 0 : index
    %c0_11 = arith.constant 0 : index
    %16 = vector.load %arg6[%c0_10, %c0_11] : memref<128x128xf32, #tpu.memory_space<vmem>>, vector<128x128xf32>
    tpu.vector_store %arg6[%c0_10, %c0_11], %15 {strides = array<i32>} : memref<128x128xf32, #tpu.memory_space<vmem>>, vector<128x128xf32>,
    return
  }
  func.func @transform_0(%arg0: i32, %arg1: i32) -> (i32, i32) {
    %c0_i32 = arith.constant 0 : i32
    %c0_i32_0 = arith.constant 0 : i32
    return %arg0, %c0_i32 : i32, i32
  }
  func.func @transform_1(%arg0: i32, %arg1: i32) -> (i32, i32) {
    %c0_i32 = arith.constant 0 : i32
    %c0_i32_0 = arith.constant 0 : i32
    return %arg1, %c0_i32 : i32, i32
  }
  func.func @transform_2(%arg0: i32, %arg1: i32) -> (i32, i32) {
    %c0_i32 = arith.constant 0 : i32
    %c0_i32_0 = arith.constant 0 : i32
    return %arg0, %c0_i32 : i32, i32
  }
  func.func @transform_3(%arg0: i32, %arg1: i32) -> (i32, i32) {
    %c0_i32 = arith.constant 0 : i32
    %c0_i32_0 = arith.constant 0 : i32
    return %c0_i32, %arg1 : i32, i32
  }
  func.func @transform_4(%arg0: i32, %arg1: i32) -> (i32, i32) {
    %c0_i32 = arith.constant 0 : i32
    return %arg0, %arg1 : i32, i32
  }
}

</mosaic_0001>

<bundles_post_ra>
// kernel: tpu_custom_call.1
= control target key start
LH: loop header
LB: loop body
LE: loop exit
PB: predicated region body
PF: predicated region fallthrough
CT: control target
= control target key end

     0   :  { %vm50_vm0 = vcmask 261120   ;;  %v866_v6 = vmov 0   ;;  %s1309_s0 = inlined_call_operand.vmem [shape: f32[128,32], index: 0, kind: input, shape index: {}]   ;;  %s1310_s1 = inlined_call_operand.vmem [shape: f32[128,32], index: 1, kind: input, shape index: {}]   ;;  %s1311_s2 = inlined_call_operand.vmem [shape: f32[128,1], index: 2, kind: input, shape index: {}]   ;;  %s1312_s3 = inlined_call_operand.vmem [shape: f32[1,128], index: 3, kind: input, shape index: {}]   ;;  %s1313_s4 = inlined_call_operand.hbm [shape: f32[128,128], index: 4, kind: output, shape index: {}]  }
   0x1   :  { %v34_v0 = vld [vmem:[%s1310_s1] sm:$0xff]  ;;  %v35_v1 = vld [vmem:[%s1310_s1 + $0x8] sm:$0xff]  ;;  %v36_v2 = vld [vmem:[%s1310_s1 + $0x10] sm:$0xff]  ;;  %809 = vset.pattern.permute.xlu1 %v866_v6  ;;  %808 = vset.pattern.permute.xlu0 %v866_v6 }
   0x2   :  { %v740_v3 = vpack.c.bf16 %v35_v1, %v34_v0  ;;  %vm906_vm1 = vmpackc.low %vm50_vm0, %vm50_vm0  ;;  %v37_v5 = vld [vmem:[%s1310_s1 + $0x18] sm:$0xff]  ;;  %v18_v8 = vld [vmem:[%s1309_s0] sm:$0xff] }
   0x3   :  { %v746_v7 = vpack.c.bf16 %v37_v5, %v36_v2  ;;  %v38_v9 = vld [vmem:[%s1310_s1 + $0x20] sm:$0xff]  ;;  %v39_v10 = vld [vmem:[%s1310_s1 + $0x28] sm:$0xff]  ;;  %716 = vmatprep.mubr.msk.f32.mxu0 %vm50_vm0, %v18_v8  ;;  %v294_v13 = vld [vmem:[%s1311_s2 + $0x10] sm:$0xff] }
   0x4   :  { %742 = vmatprep.subr.msk.bf16.mxu0 %vm906_vm1, %v740_v3  ;;  %788 = vmatprep.subr.msk.bf16.mxu1 %vm906_vm1, %v740_v3  ;;  %v26_v11 = vld [vmem:[%s1309_s0 + $0x40] sm:$0xff]  ;;  %v752_v12 = vpack.c.bf16 %v39_v10, %v38_v9  ;;  %v40_v15 = vld [vmem:[%s1310_s1 + $0x30] sm:$0xff]  ;;  %v41_v16 = vld [vmem:[%s1310_s1 + $0x38] sm:$0xff] }
   0x5   :  { %745 = vmatpush3.bf16.xpose.msk.msra.mxu0 %vm906_vm1, %v740_v3  ;;  %796 = vmatpush3.bf16.xpose.msk.msra.mxu1 %vm906_vm1, %v740_v3  ;;  %v292_v14 = vld [vmem:[%s1311_s2] sm:$0xff]  ;;  %v295_v17 = vld [vmem:[%s1311_s2 + $0x18] sm:$0xff]  ;;  %v293_v18 = vld [vmem:[%s1311_s2 + $0x8] sm:$0xff] }
   0x6   :  { %748 = vmatprep.subr.msk.bf16.mxu0 %vm906_vm1, %v746_v7  ;;  %789 = vmatprep.subr.msk.bf16.mxu1 %vm906_vm1, %v746_v7 }
   0x7   :  { %728 = vmatprep.mubr.msk.f32.mxu1 %vm50_vm0, %v26_v11  ;;  %321 = vperm.xlu1 %809, %v294_v13  }
   0x8   :  { %311 = vperm.xlu0 %808, %v292_v14  }
   0xd   :  { %751 = vmatpush3.bf16.xpose.msk.msra.mxu0 %vm906_vm1, %v746_v7  ;;  %797 = vmatpush3.bf16.xpose.msk.msra.mxu1 %vm906_vm1, %v746_v7 }
   0xe   :  { %754 = vmatprep.subr.msk.bf16.mxu0 %vm906_vm1, %v752_v12  ;;  %790 = vmatprep.subr.msk.bf16.mxu1 %vm906_vm1, %v752_v12 }
   0xf   :  { %9 = vsyncpa [#allocation3], 0  ;;  %v758_v19 = vpack.c.bf16 %v41_v16, %v40_v15  ;;  %326 = vperm.xlu1 %809, %v295_v17   ;;  %316 = vperm.xlu0 %808, %v293_v18   ;;  %v297_v20 = vld [vmem:[%s1311_s2 + $0x28] sm:$0xff]  ;;  %v296_v21 = vld [vmem:[%s1311_s2 + $0x20] sm:$0xff] }
  0x10   :  { %v42_v22 = vld [vmem:[%s1310_s1 + $0x40] sm:$0xff]  ;;  %v43_v23 = vld [vmem:[%s1310_s1 + $0x48] sm:$0xff]  ;;  %v299_v24 = vld [vmem:[%s1311_s2 + $0x38] sm:$0xff] }
  0x11   :  { %v298_v25 = vld [vmem:[%s1311_s2 + $0x30] sm:$0xff]  ;;  %v764_v26 = vpack.c.bf16 %v43_v23, %v42_v22  ;;  %v301_v27 = vld [vmem:[%s1311_s2 + $0x48] sm:$0xff]  ;;  %v300_v28 = vld [vmem:[%s1311_s2 + $0x40] sm:$0xff] }
  0x12   :  { %v44_v29 = vld [vmem:[%s1310_s1 + $0x50] sm:$0xff]  ;;  %v45_v30 = vld [vmem:[%s1310_s1 + $0x58] sm:$0xff]  ;;  %v305_v34 = vld [vmem:[%s1311_s2 + $0x68] sm:$0xff] }
  0x13   :  { %336 = vperm.xlu1 %809, %v297_v20   ;;  %331 = vperm.xlu0 %808, %v296_v21   ;;  %v303_v31 = vld [vmem:[%s1311_s2 + $0x58] sm:$0xff]  ;;  %v302_v32 = vld [vmem:[%s1311_s2 + $0x50] sm:$0xff]  ;;  %v770_v33 = vpack.c.bf16 %v45_v30, %v44_v29  ;;  %v304_v35 = vld [vmem:[%s1311_s2 + $0x60] sm:$0xff] }
  0x14   :  { %v46_v36 = vld [vmem:[%s1310_s1 + $0x60] sm:$0xff]  ;;  %v47_v37 = vld [vmem:[%s1310_s1 + $0x68] sm:$0xff]  ;;  %v307_v38 = vld [vmem:[%s1311_s2 + $0x78] sm:$0xff] }
  0x15   :  { %757 = vmatpush3.bf16.xpose.msk.msra.mxu0 %vm906_vm1, %v752_v12  ;;  %798 = vmatpush3.bf16.xpose.msk.msra.mxu1 %vm906_vm1, %v752_v12  ;;  %v306_v39 = vld [vmem:[%s1311_s2 + $0x70] sm:$0xff]  ;;  %v776_v40 = vpack.c.bf16 %v47_v37, %v46_v36  ;;  %v49_v42 = vld [vmem:[%s1310_s1 + $0x78] sm:$0xff]  ;;  %v19_v44 = vld [vmem:[%s1309_s0 + $0x8] sm:$0xff] }
  0x16   :  { %760 = vmatprep.subr.msk.bf16.mxu0 %vm906_vm1, %v758_v19  ;;  %791 = vmatprep.subr.msk.bf16.mxu1 %vm906_vm1, %v758_v19  ;;  %v48_v41 = vld [vmem:[%s1310_s1 + $0x70] sm:$0xff]  ;;  %v27_v45 = vld [vmem:[%s1309_s0 + $0x48] sm:$0xff]  ;;  %v21_v48 = vld [vmem:[%s1309_s0 + $0x18] sm:$0xff] }
  0x17   :  { %346 = vperm.xlu1 %809, %v299_v24   ;;  %341 = vperm.xlu0 %808, %v298_v25   ;;  %v782_v43 = vpack.c.bf16 %v49_v42, %v48_v41  ;;  %v20_v46 = vld [vmem:[%s1309_s0 + $0x10] sm:$0xff]  ;;  %v29_v49 = vld [vmem:[%s1309_s0 + $0x58] sm:$0xff]  ;;  %v22_v50 = vld [vmem:[%s1309_s0 + $0x20] sm:$0xff] }
  0x18   :  { %v28_v47 = vld [vmem:[%s1309_s0 + $0x50] sm:$0xff]  ;;  %v30_v51 = vld [vmem:[%s1309_s0 + $0x60] sm:$0xff]  ;;  %v23_v52 = vld [vmem:[%s1309_s0 + $0x28] sm:$0xff] }
  0x19   :  { %v31_v53 = vld [vmem:[%s1309_s0 + $0x68] sm:$0xff]  ;;  %v24_v54 = vld [vmem:[%s1309_s0 + $0x30] sm:$0xff]  ;;  %v25_v56 = vld [vmem:[%s1309_s0 + $0x38] sm:$0xff] }
  0x1a   :  { %v32_v55 = vld [vmem:[%s1309_s0 + $0x70] sm:$0xff]  ;;  %v33_v57 = vld [vmem:[%s1309_s0 + $0x78] sm:$0xff]  ;;  %v651_v6 = vld [vmem:[%s1312_s3] ss:$0 sm:$0xff]  ;;  %s867_s0 = smov [#allocation2]  }
  0x1b   :  { %356 = vperm.xlu1 %809, %v301_v27   ;;  %351 = vperm.xlu0 %808, %v300_v28   ;;  %s608_s3 = sshll.u32 %s867_s0, 4  ;;  %s609_s3 = int_to_ptr.vmem [resolvable:$true] %s608_s3 }
  0x1c   :  { %s842_s5 = scalar_lea.vmem %s609_s3, 2048  ;;  %p847_p1 = scmp.lt.s32.totalorder %s609_s3, %s609_s3 }
  0x1d   :  { %763 = vmatpush3.bf16.xpose.msk.msra.mxu0 %vm906_vm1, %v758_v19  ;;  %799 = vmatpush3.bf16.xpose.msk.msra.mxu1 %vm906_vm1, %v758_v19  ;;  %p843_p0 = scmp.ne.s32.totalorder %s609_s3, %s842_s5  ;;  %p848_p2 = scmp.lt.s32.totalorder %s842_s5, %s842_s5 }
  0x1e   :  { %766 = vmatprep.subr.msk.bf16.mxu0 %vm906_vm1, %v764_v26  ;;  %792 = vmatprep.subr.msk.bf16.mxu1 %vm906_vm1, %v764_v26 }
  0x1f   :  { %366 = vperm.xlu1 %809, %v303_v31   ;;  %361 = vperm.xlu0 %808, %v302_v32   ;;  %p849_p3 = por %p848_p2, %p847_p1 }
  0x21   :  { %p850_p4 = pnand %p849_p3, %p843_p0 }
  0x23   :  { %376 = vperm.xlu1 %809, %v305_v34   ;;  %371 = vperm.xlu0 %808, %v304_v35  }
  0x25   :  { %769 = vmatpush3.bf16.xpose.msk.msra.mxu0 %vm906_vm1, %v764_v26  ;;  %800 = vmatpush3.bf16.xpose.msk.msra.mxu1 %vm906_vm1, %v764_v26 }
  0x26   :  { %772 = vmatprep.subr.msk.bf16.mxu0 %vm906_vm1, %v770_v33  ;;  %793 = vmatprep.subr.msk.bf16.mxu1 %vm906_vm1, %v770_v33 }
  0x27   :  { %386 = vperm.xlu1 %809, %v307_v38   ;;  %381 = vperm.xlu0 %808, %v306_v39  }
  0x2d   :  { %775 = vmatpush3.bf16.xpose.msk.msra.mxu0 %vm906_vm1, %v770_v33  ;;  %801 = vmatpush3.bf16.xpose.msk.msra.mxu1 %vm906_vm1, %v770_v33 }
  0x2e   :  { %778 = vmatprep.subr.msk.bf16.mxu0 %vm906_vm1, %v776_v40  ;;  %794 = vmatprep.subr.msk.bf16.mxu1 %vm906_vm1, %v776_v40 }
  0x35   :  { %781 = vmatpush3.bf16.xpose.msk.msra.mxu0 %vm906_vm1, %v776_v40  ;;  %802 = vmatpush3.bf16.xpose.msk.msra.mxu1 %vm906_vm1, %v776_v40 }
  0x36   :  { %784 = vmatprep.subr.msk.bf16.mxu0 %vm906_vm1, %v782_v43  ;;  %795 = vmatprep.subr.msk.bf16.mxu1 %vm906_vm1, %v782_v43 }
  0x3d   :  { %787 = vmatpush3.bf16.xpose.msk.msra.mxu0 %vm906_vm1, %v782_v43  ;;  %803 = vmatpush3.bf16.xpose.msk.msra.mxu1 %vm906_vm1, %v782_v43 }
  0x44   :  { %717 = vmatmul.mubr.msk.f32.vlgmr.msra.gmra.mrb[0].mxu0 %vm50_vm0, %v19_v44  ;;  %729 = vmatmul.mubr.msk.f32.vlgmr.msra.gmra.mrb[0].mxu1 %vm50_vm0, %v27_v45 }
  0x45   :  { %719 = vmatprep.mubr.msk.f32.mxu0 %vm50_vm0, %v20_v46  ;;  %731 = vmatprep.mubr.msk.f32.mxu1 %vm50_vm0, %v28_v47 }
  0x48   :  { %720 = vmatmul.mubr.msk.f32.gmra.mrb[2].mxu0 %vm50_vm0, %v21_v48  ;;  %732 = vmatmul.mubr.msk.f32.gmra.mrb[2].mxu1 %vm50_vm0, %v29_v49 }
  0x49   :  { %722 = vmatprep.mubr.msk.f32.mxu0 %vm50_vm0, %v22_v50  ;;  %734 = vmatprep.mubr.msk.f32.mxu1 %vm50_vm0, %v30_v51 }
  0x4c   :  { %723 = vmatmul.mubr.msk.f32.gmra.mrb[4].mxu0 %vm50_vm0, %v23_v52  ;;  %735 = vmatmul.mubr.msk.f32.gmra.mrb[4].mxu1 %vm50_vm0, %v31_v53 }
  0x4d   :  { %725 = vmatprep.mubr.msk.f32.mxu0 %vm50_vm0, %v24_v54  ;;  %737 = vmatprep.mubr.msk.f32.mxu1 %vm50_vm0, %v32_v55 }
  0x50   :  { %726 = vmatmul.mubr.msk.f32.gmra.mrb[6].mxu0 %vm50_vm0, %v25_v56  ;;  %738 = vmatmul.mubr.msk.f32.gmra.mrb[6].mxu1 %vm50_vm0, %v33_v57 }
  0x86   :  { %v322_v58 = vpop.permute.xlu1 %321 }
  0x87   :  { %v312_v59 = vpop.permute.xlu0 %311  ;;  %v397_v27 = vadd.f32 %v651_v6, %v322_v58 }
  0x88   :  { %v395_v17 = vadd.f32 %v651_v6, %v312_v59 }
  0x8e   :  { %v327_v60 = vpop.permute.xlu1 %326  ;;  %v317_v61 = vpop.permute.xlu0 %316 }
  0x8f   :  { %v396_v11 = vadd.f32 %v651_v6, %v317_v61  ;;  %v398_v28 = vadd.f32 %v651_v6, %v327_v60 }
  0x92   :  { %v337_v62 = vpop.permute.xlu1 %336  ;;  %v332_v63 = vpop.permute.xlu0 %331 }
  0x93   :  { %v1132_v33 = vadd.f32 %v651_v6, %v337_v62  ;;  %v1139_v42 = vadd.f32 %v651_v6, %v332_v63 }
  0x96   :  { %v347_v0 = vpop.permute.xlu1 %346  ;;  %v342_v1 = vpop.permute.xlu0 %341 }
  0x97   :  { %v1141_v43 = vadd.f32 %v651_v6, %v347_v0  ;;  %v1143_v44 = vadd.f32 %v651_v6, %v342_v1 }
  0x9a   :  { %v357_v2 = vpop.permute.xlu1 %356  ;;  %v352_v3 = vpop.permute.xlu0 %351 }
  0x9b   :  { %v404_v12 = vadd.f32 %v651_v6, %v357_v2  ;;  %v403_v18 = vadd.f32 %v651_v6, %v352_v3 }
  0x9e   :  { %v367_v4 = vpop.permute.xlu1 %366  ;;  %v362_v5 = vpop.permute.xlu0 %361 }
  0x9f   :  { %v406_v47 = vadd.f32 %v651_v6, %v367_v4  ;;  %v405_v48 = vadd.f32 %v651_v6, %v362_v5 }
  0xa2   :  { %v377_v7 = vpop.permute.xlu1 %376  ;;  %v372_v8 = vpop.permute.xlu0 %371 }
  0xa3   :  { %v408_v49 = vadd.f32 %v651_v6, %v377_v7  ;;  %v1147_v52 = vadd.f32 %v651_v6, %v372_v8 }
  0xa6   :  { %v387_v37 = vpop.permute.xlu1 %386  ;;  %v382_v38 = vpop.permute.xlu0 %381 }
  0xa7   :  { %v1149_v53 = vadd.f32 %v651_v6, %v387_v37  ;;  %v1151_v54 = vadd.f32 %v651_v6, %v382_v38 }
 0x117   :  { %v718_v9 = vpop.f32.mrb[0].mxu0  ;;  %v730_v10 = vpop.f32.mrb[0].mxu1 }
 0x118   :  { %v412_v13 = vmul.f32 2.0, %v718_v9  ;;  %v420_v14 = vmul.f32 2.0, %v730_v10  ;;  %v213_v15 = vpop.f32.mrb[1].mxu0  ;;  %v253_v16 = vpop.f32.mrb[1].mxu1 }
 0x119   :  { %v411_v19 = vmul.f32 2.0, %v213_v15  ;;  %v419_v20 = vmul.f32 2.0, %v253_v16 }
 0x11a   :  { %v428_v21 = vsub.f32 %v396_v11, %v412_v13  ;;  %v436_v22 = vsub.f32 %v404_v12, %v420_v14 }
 0x11b   :  { %v427_v23 = vsub.f32 %v395_v17, %v411_v19  ;;  %v435_v24 = vsub.f32 %v403_v18, %v419_v20  ;;  %v721_v25 = vpop.f32.mrb[2].mxu0  ;;  %v733_v26 = vpop.f32.mrb[2].mxu1 }
 0x11c   :  { %v1128_v29 = vmax.f32 %v428_v21, 0.0  ;;  %v1130_v30 = vmax.f32 %v436_v22, 0.0  ;;  %v223_v31 = vpop.f32.mrb[3].mxu0  ;;  %v263_v32 = vpop.f32.mrb[3].mxu1  ;;  %v414_v36 = vmul.f32 2.0, %v721_v25  ;;  %v422_v39 = vmul.f32 2.0, %v733_v26 }
 0x11d   :  { %v1134_v34 = vmax.f32 %v427_v23, 0.0  ;;  %v1136_v35 = vmax.f32 %v435_v24, 0.0  ;;  %v413_v40 = vmul.f32 2.0, %v223_v31  ;;  %v421_v41 = vmul.f32 2.0, %v263_v32 }
 0x11e   :  { %810 = vrsqrt.f32 %v1128_v29  ;;  %vm468_vm2 = vcmp.eq.f32.partialorder %v1128_v29, inf  ;;  %v430_v55 = vsub.f32 %v398_v28, %v414_v36  ;;  %v438_v56 = vsub.f32 %v406_v47, %v422_v39 }
 0x11f   :  { %812 = vrsqrt.f32 %v1130_v30  ;;  %v724_v45 = vpop.f32.mrb[4].mxu0  ;;  %v736_v46 = vpop.f32.mrb[4].mxu1  ;;  %v429_v57 = vsub.f32 %v397_v27, %v413_v40  ;;  %v437_v58 = vsub.f32 %v405_v48, %v421_v41  ;;  %vm470_vm3 = vcmp.eq.f32.partialorder %v1128_v29, 0.0 }
 0x120   :  { %814 = vrsqrt.f32 %v1134_v34  ;;  %v233_v50 = vpop.f32.mrb[5].mxu0  ;;  %v273_v51 = vpop.f32.mrb[5].mxu1  ;;  %v471_v59 = vand.u32 2147483648, %v1128_v29  ;;  %v416_v60 = vmul.f32 2.0, %v724_v45  ;;  %v424_v61 = vmul.f32 2.0, %v736_v46 }
 0x121   :  { %816 = vrsqrt.f32 %v1136_v35  ;;  %vm524_vm4 = vcmp.eq.f32.partialorder %v1130_v30, inf  ;;  %v1162_v0 = vmax.f32 %v430_v55, 0.0  ;;  %v1164_v1 = vmax.f32 %v438_v56, 0.0 }
 0x122   :  { %v1166_v2 = vmax.f32 %v429_v57, 0.0  ;;  %vm526_vm5 = vcmp.eq.f32.partialorder %v1130_v30, 0.0  ;;  %v1173_v5 = vmax.f32 %v437_v58, 0.0  ;;  %v415_v6 = vmul.f32 2.0, %v233_v50 }
 0x123   :  { %v1157_v62 = vpop.f32.mrb[6].mxu0  ;;  %v1159_v63 = vpop.f32.mrb[6].mxu1  ;;  %v423_v7 = vmul.f32 2.0, %v273_v51  ;;  %v527_v8 = vand.u32 2147483648, %v1130_v30  ;;  %vm461_vm6 = vcmp.eq.f32.partialorder %v1134_v34, inf  ;;  %818 = vrsqrt.f32 %v1162_v0 }
 0x124   :  { %v1168_v3 = vpop.f32.mrb[7].mxu0  ;;  %v1170_v4 = vpop.f32.mrb[7].mxu1  ;;  %v432_v9 = vsub.f32 %v1132_v33, %v416_v60  ;;  %vm463_vm7 = vcmp.eq.f32.partialorder %v1134_v34, 0.0  ;;  %v464_v10 = vand.u32 2147483648, %v1134_v34  ;;  %820 = vrsqrt.f32 %v1164_v1 }
 0x125   :  { %v440_v11 = vsub.f32 %v408_v49, %v424_v61  ;;  %vm517_vm8 = vcmp.eq.f32.partialorder %v1136_v35, inf  ;;  %vm519_vm9 = vcmp.eq.f32.partialorder %v1136_v35, 0.0  ;;  %v520_v13 = vand.u32 2147483648, %v1136_v35 }
 0x126   :  { %822 = vrsqrt.f32 %v1166_v2  ;;  %v431_v16 = vsub.f32 %v1139_v42, %v415_v6  ;;  %v439_v17 = vsub.f32 %v1147_v52, %v423_v7  ;;  %vm482_vm10 = vcmp.eq.f32.partialorder %v1162_v0, inf }
 0x127   :  { %824 = vrsqrt.f32 %v1173_v5  ;;  %v485_v20 = vand.u32 2147483648, %v1162_v0  ;;  %v1193_v21 = vmax.f32 %v432_v9, 0.0  ;;  %vm484_vm11 = vcmp.eq.f32.partialorder %v1162_v0, 0.0 }
 0x128   :  { %v811_v12 = vpop.eup %810  ;;  %vm538_vm12 = vcmp.eq.f32.partialorder %v1164_v1, inf  ;;  %v1201_v25 = vmax.f32 %v440_v11, 0.0  ;;  %v1215_v36 = vmax.f32 %v431_v16, 0.0  ;;  %v1222_v39 = vmax.f32 %v439_v17, 0.0 }
 0x129   :  { %v813_v14 = vpop.eup %812  ;;  %v467_v15 = vmul.f32 %v811_v12, %v1128_v29  ;;  %826 = vrsqrt.f32 %v1193_v21  ;;  %vm540_vm13 = vcmp.eq.f32.partialorder %v1164_v1, 0.0  ;;  %vm475_vm14 = vcmp.eq.f32.partialorder %v1166_v2, inf }
 0x12a   :  { %v815_v18 = vpop.eup %814  ;;  %v523_v19 = vmul.f32 %v813_v14, %v1130_v30  ;;  %828 = vrsqrt.f32 %v1201_v25  ;;  %vm477_vm15 = vcmp.eq.f32.partialorder %v1166_v2, 0.0  ;;  %vm531_vm0 = vcmp.eq.f32.partialorder %v1173_v5, inf }
 0x12b   :  { %v817_v22 = vpop.eup %816  ;;  %v469_v23 = vsel %vm468_vm2, %v1128_v29, %v467_v15  ;;  %v460_v24 = vmul.f32 %v815_v18, %v1134_v34  ;;  %830 = vrsqrt.f32 %v1215_v36  ;;  %vm533_vm1 = vcmp.eq.f32.partialorder %v1173_v5, 0.0 }
 0x12c   :  { %v472_v26 = vsel %vm470_vm3, %v471_v59, %v469_v23  ;;  %v525_v27 = vsel %vm524_vm4, %v1130_v30, %v523_v19  ;;  %v516_v28 = vmul.f32 %v817_v22, %v1136_v35  ;;  %v534_v49 = vand.u32 2147483648, %v1173_v5 }
 0x12d   :  { %v572_v31 = vmul.f32 0.5, %v472_v26  ;;  %v528_v32 = vsel %vm526_vm5, %v527_v8, %v525_v27  ;;  %v462_v33 = vsel %vm461_vm6, %v1134_v34, %v460_v24  ;;  %v819_v41 = vpop.eup %818  ;;  %v541_v34 = vand.u32 2147483648, %v1164_v1 }
 0x12e   :  { %v580_v29 = vmul.f32 0.5, %v528_v32  ;;  %v465_v37 = vsel %vm463_vm7, %v464_v10, %v462_v33  ;;  %v518_v38 = vsel %vm517_vm8, %v1136_v35, %v516_v28  ;;  %v821_v45 = vpop.eup %820  ;;  %v481_v46 = vmul.f32 %v819_v41, %v1162_v0 }
 0x12f   :  { %588 = vst [vmem:[#allocation2 + $0x8] sm:$0xff] %v572_v31  ;;  %v571_v40 = vmul.f32 0.5, %v465_v37  ;;  %v521_v30 = vsel %vm519_vm9, %v520_v13, %v518_v38  ;;  %v478_v35 = vand.u32 2147483648, %v1166_v2  ;;  %v537_v48 = vmul.f32 %v821_v45, %v1164_v1 }
 0x130   :  { %596 = vst [vmem:[#allocation2 + $0x48] sm:$0xff] %v580_v29  ;;  %v579_v42 = vmul.f32 0.5, %v521_v30  ;;  %v823_v47 = vpop.eup %822  ;;  %832 = vrsqrt.f32 %v1222_v39  ;;  %v483_v51 = vsel %vm482_vm10, %v1162_v0, %v481_v46  ;;  %vm496_vm2 = vcmp.eq.f32.partialorder %v1193_v21, inf }
 0x131   :  { %587 = vst [vmem:[#allocation2] sm:$0xff] %v571_v40  ;;  %v825_v50 = vpop.eup %824  ;;  %v474_v52 = vmul.f32 %v823_v47, %v1166_v2  ;;  %vm498_vm3 = vcmp.eq.f32.partialorder %v1193_v21, 0.0  ;;  %v486_v55 = vsel %vm484_vm11, %v485_v20, %v483_v51  ;;  %v539_v56 = vsel %vm538_vm12, %v1164_v1, %v537_v48 }
 0x132   :  { %595 = vst [vmem:[#allocation2 + $0x40] sm:$0xff] %v579_v42  ;;  %v530_v57 = vmul.f32 %v825_v50, %v1173_v5  ;;  %v418_v58 = vmul.f32 2.0, %v1157_v62  ;;  %v574_v59 = vmul.f32 0.5, %v486_v55  ;;  %v542_v60 = vsel %vm540_vm13, %v541_v34, %v539_v56 }
 0x133   :  { %v476_v61 = vsel %vm475_vm14, %v1166_v2, %v474_v52  ;;  %v426_v6 = vmul.f32 2.0, %v1159_v63  ;;  %v827_v0 = vpop.eup %826  ;;  %v582_v7 = vmul.f32 0.5, %v542_v60  ;;  %v499_v2 = vand.u32 2147483648, %v1193_v21 }
 0x134   :  { %v479_v8 = vsel %vm477_vm15, %v478_v35, %v476_v61  ;;  %v532_v9 = vsel %vm531_vm0, %v1173_v5, %v530_v57  ;;  %v434_v62 = vsub.f32 %v1141_v43, %v418_v58  ;;  %590 = vst [vmem:[#allocation2 + $0x18] sm:$0xff] %v574_v59  ;;  %v495_v11 = vmul.f32 %v827_v0, %v1193_v21  ;;  %v829_v14 = vpop.eup %828 }
 0x135   :  { %v573_v1 = vmul.f32 0.5, %v479_v8  ;;  %v535_v10 = vsel %vm533_vm1, %v534_v49, %v532_v9  ;;  %v442_v63 = vsub.f32 %v1149_v53, %v426_v6  ;;  %598 = vst [vmem:[#allocation2 + $0x58] sm:$0xff] %v582_v7  ;;  %vm552_vm4 = vcmp.eq.f32.partialorder %v1201_v25, inf  ;;  %v831_v18 = vpop.eup %830 }
 0x136   :  { %v581_v12 = vmul.f32 0.5, %v535_v10  ;;  %v450_v13 = vmax.f32 %v434_v62, 0.0  ;;  %v497_v43 = vsel %vm496_vm2, %v1193_v21, %v495_v11  ;;  %vm554_vm5 = vcmp.eq.f32.partialorder %v1201_v25, 0.0 }
 0x137   :  { %589 = vst [vmem:[#allocation2 + $0x10] sm:$0xff] %v573_v1  ;;  %v458_v5 = vmax.f32 %v442_v63, 0.0  ;;  %v417_v15 = vmul.f32 2.0, %v1168_v3  ;;  %v500_v53 = vsel %vm498_vm3, %v499_v2, %v497_v43  ;;  %v551_v16 = vmul.f32 %v829_v14, %v1201_v25 }
 0x138   :  { %597 = vst [vmem:[#allocation2 + $0x50] sm:$0xff] %v581_v12  ;;  %834 = vrsqrt.f32 %v450_v13  ;;  %v425_v17 = vmul.f32 2.0, %v1170_v4  ;;  %v576_v19 = vmul.f32 0.5, %v500_v53  ;;  %v555_v20 = vand.u32 2147483648, %v1201_v25 }
 0x139   :  { %vm489_vm6 = vcmp.eq.f32.partialorder %v1215_v36, inf  ;;  %836 = vrsqrt.f32 %v458_v5  ;;  %v553_v3 = vsel %vm552_vm4, %v1201_v25, %v551_v16  ;;  %v488_v21 = vmul.f32 %v831_v18, %v1215_v36 }
 0x13a   :  { %v833_v22 = vpop.eup %832  ;;  %vm491_vm7 = vcmp.eq.f32.partialorder %v1215_v36, 0.0  ;;  %v492_v23 = vand.u32 2147483648, %v1215_v36  ;;  %592 = vst [vmem:[#allocation2 + $0x28] sm:$0xff] %v576_v19  ;;  %v556_v4 = vsel %vm554_vm5, %v555_v20, %v553_v3  ;;  %vm545_vm8 = vcmp.eq.f32.partialorder %v1222_v39, inf }
 0x13b   :  { %v544_v24 = vmul.f32 %v833_v22, %v1222_v39  ;;  %v433_v26 = vsub.f32 %v1143_v44, %v417_v15  ;;  %v584_v27 = vmul.f32 0.5, %v556_v4  ;;  %v490_v28 = vsel %vm489_vm6, %v1215_v36, %v488_v21 }
 0x13c   :  { %v548_v31 = vand.u32 2147483648, %v1222_v39  ;;  %v441_v32 = vsub.f32 %v1151_v54, %v425_v17  ;;  %v493_v33 = vsel %vm491_vm7, %v492_v23, %v490_v28  ;;  %vm547_vm9 = vcmp.eq.f32.partialorder %v1222_v39, 0.0 }
 0x13d   :  { %v546_v29 = vsel %vm545_vm8, %v1222_v39, %v544_v24  ;;  %v449_v25 = vmax.f32 %v433_v26, 0.0  ;;  %600 = vst [vmem:[#allocation2 + $0x68] sm:$0xff] %v584_v27  ;;  %v575_v37 = vmul.f32 0.5, %v493_v33  ;;  %vm510_vm10 = vcmp.eq.f32.partialorder %v450_v13, inf }
 0x13e   :  { %v549_v38 = vsel %vm547_vm9, %v548_v31, %v546_v29  ;;  %v457_v40 = vmax.f32 %v441_v32, 0.0  ;;  %v513_v54 = vand.u32 2147483648, %v450_v13  ;;  %vm512_vm11 = vcmp.eq.f32.partialorder %v450_v13, 0.0 }
 0x13f   :  { %v583_v30 = vmul.f32 0.5, %v549_v38  ;;  %838 = vrsqrt.f32 %v449_v25  ;;  %591 = vst [vmem:[#allocation2 + $0x20] sm:$0xff] %v575_v37  ;;  %vm566_vm12 = vcmp.eq.f32.partialorder %v458_v5, inf  ;;  %v569_v39 = vand.u32 2147483648, %v458_v5 }
 0x140   :  { %840 = vrsqrt.f32 %v457_v40  ;;  %vm568_vm13 = vcmp.eq.f32.partialorder %v458_v5, 0.0  ;;  %vm503_vm14 = vcmp.eq.f32.partialorder %v449_v25, inf  ;;  %v506_v52 = vand.u32 2147483648, %v449_v25 }
 0x141   :  { %599 = vst [vmem:[#allocation2 + $0x60] sm:$0xff] %v583_v30  ;;  %vm505_vm15 = vcmp.eq.f32.partialorder %v449_v25, 0.0  ;;  %vm559_vm0 = vcmp.eq.f32.partialorder %v457_v40, inf  ;;  %v562_v57 = vand.u32 2147483648, %v457_v40  ;;  %vm561_vm1 = vcmp.eq.f32.partialorder %v457_v40, 0.0 }
 0x142   :  { %v835_v44 = vpop.eup %834 }
 0x143   :  { %v837_v36 = vpop.eup %836  ;;  %v509_v41 = vmul.f32 %v835_v44, %v450_v13 }
 0x144   :  { %v565_v42 = vmul.f32 %v837_v36, %v458_v5 }
 0x145   :  { %v511_v34 = vsel %vm510_vm10, %v450_v13, %v509_v41 }
 0x146   :  { %v514_v45 = vsel %vm512_vm11, %v513_v54, %v511_v34  ;;  %v567_v46 = vsel %vm566_vm12, %v458_v5, %v565_v42 }
 0x147   :  { %v578_v35 = vmul.f32 0.5, %v514_v45  ;;  %v570_v47 = vsel %vm568_vm13, %v569_v39, %v567_v46 }
 0x148   :  { %v586_v48 = vmul.f32 0.5, %v570_v47 }
 0x149   :  { %v839_v49 = vpop.eup %838  ;;  %594 = vst [vmem:[#allocation2 + $0x38] sm:$0xff] %v578_v35 }
 0x14a   :  { %v841_v50 = vpop.eup %840  ;;  %602 = vst [vmem:[#allocation2 + $0x78] sm:$0xff] %v586_v48  ;;  %v502_v51 = vmul.f32 %v839_v49, %v449_v25 }
 0x14b   :  { %v558_v55 = vmul.f32 %v841_v50, %v457_v40 }
 0x14c   :  { %v504_v56 = vsel %vm503_vm14, %v449_v25, %v502_v51 }
 0x14d   :  { %v507_v58 = vsel %vm505_vm15, %v506_v52, %v504_v56  ;;  %v560_v59 = vsel %vm559_vm0, %v457_v40, %v558_v55 }
 0x14e   :  { %v577_v60 = vmul.f32 0.5, %v507_v58  ;;  %v563_v61 = vsel %vm561_vm1, %v562_v57, %v560_v59 }
 0x14f   :  { %v585_v6 = vmul.f32 0.5, %v563_v61 }
 0x150   :  { %593 = vst [vmem:[#allocation2 + $0x30] sm:$0xff] %v577_v60 }
 0x151   :  { %601 = vst [vmem:[#allocation2 + $0x70] sm:$0xff] %v585_v6 }
 0x152   :  { %853 = shalt.err (!%p850_p4)
}
 0x153   :  { %s854_s8 = scalar_lea.hbm %s1313_s4, 2048 }
 0x154   :  { %p855_p5 = scmp.ne.s32.totalorder %s1313_s4, %s854_s8  ;;  %p858_p6 = scmp.lt.u32.totalorder %s854_s8, %s1313_s4 }
 0x156   :  { %p860_p7 = pnand %p858_p6, %p855_p5 }
 0x158   :  { %863 = shalt.err (!%p860_p7)
}
 0x159   :  { %s868_s13 = smov 128   ;;  %s869_s14 = smov 8  }
 0x15a   :  { %614 = dma.vmem_to_hbm [thread:$0]  %s609_s3, 2048, %s1313_s4, [#allocation3], %s868_s13, %s868_s13, %s869_s14  }
 0x15b   :  { %864 = dma.done.wait [#allocation3], 2048  }
 0x15c   :  { %865 = vsyncadd [#allocation3], 4294965248 }
 0x15d   :  { %618 = vsyncpa [#allocation3], 1 }

</bundles_post_ra>
